<compile_context>
chip_gen: v7x
topology: tpu7x:2x2x1
jax: 0.10.0
libtpu: 0.0.40
codegen_flags: <defaults>
</compile_context>

<pallas_src>
import math
from functools import partial

import jax
import jax.numpy as jnp
from jax import lax
from jax.experimental import pallas as pl
from jax.experimental.pallas import tpu as pltpu


# ----------------------------------------------------------------------------
# Tiled linear projection kernel:  o = x @ w + b
# ----------------------------------------------------------------------------
def _linear_kernel(x_ref, w_ref, b_ref, o_ref):
    acc = jnp.dot(x_ref[...], w_ref[...], preferred_element_type=jnp.float32)
    o_ref[...] = (acc + b_ref[...].astype(jnp.float32)).astype(o_ref.dtype)


def pallas_linear(x2d, w, b, *, tm=256):
    """x2d: (M, K), w: (K, N), b: (N,) -> (M, N).  Tiled over M, weight resident."""
    M, K = x2d.shape
    Kw, N = w.shape
    assert K == Kw
    tm = min(tm, M)
    return pl.pallas_call(
        _linear_kernel,
        out_shape=jax.ShapeDtypeStruct((M, N), x2d.dtype),
        grid=(pl.cdiv(M, tm),),
        in_specs=[
            pl.BlockSpec((tm, K), lambda i: (i, 0)),   # activations streamed over M
            pl.BlockSpec((K, N), lambda i: (0, 0)),    # weight resident across grid
            pl.BlockSpec((1, N), lambda i: (0, 0)),    # bias resident
        ],
        out_specs=pl.BlockSpec((tm, N), lambda i: (i, 0)),
        compiler_params=pltpu.CompilerParams(dimension_semantics=("parallel",)),
    )(x2d, w, b.reshape(1, N))


# ----------------------------------------------------------------------------
# Per-window multi-head attention kernel (all heads per grid step)
# ----------------------------------------------------------------------------
def _window_attn_kernel(qkv_ref, o_ref, *, num_heads, head_dim, scale):
    C = num_heads * head_dim

    tok = qkv_ref[0]                      # fused: (ws, ws, 3C) ; fallback: (N_, 3C)
    if tok.ndim == 3:                     # fold window pixels into the token axis
        ws = tok.shape[0]
        tok = tok.reshape(ws * ws, 3 * C)

    head_outs = []
    for h in range(num_heads):
        # qkv channel layout is [q(C) | k(C) | v(C)], each C = heads * head_dim
        q = tok[:, h * head_dim:(h + 1) * head_dim]                   # (N_, hd)
        k = tok[:, C + h * head_dim:C + (h + 1) * head_dim]           # (N_, hd)
        v = tok[:, 2 * C + h * head_dim:2 * C + (h + 1) * head_dim]   # (N_, hd)

        # scores: contract head_dim (MXU keeps operand dtype, accumulates f32)
        s = lax.dot_general(q, k, (((1,), (1,)), ((), ())),
                            preferred_element_type=jnp.float32) * scale
        s = s - jnp.max(s, axis=-1, keepdims=True)
        p = jnp.exp(s)
        p = p * pl.reciprocal(jnp.sum(p, axis=-1, keepdims=True), approx=True)

        head_outs.append(jnp.dot(p.astype(v.dtype), v,
                                 preferred_element_type=jnp.float32))

    win = jnp.concatenate(head_outs, axis=-1)            # (N_, C)  lane-dense tile

    if len(o_ref.shape) == 4:                            # fused: (1, ws, ws, C)
        ws = o_ref.shape[1]
        o_ref[0] = win.reshape(ws, ws, C).astype(o_ref.dtype)
    else:                                                # fallback: (1, N_, C)
        o_ref[0] = win.astype(o_ref.dtype)


# ----------------------------------------------------------------------------
# Full forward
# ----------------------------------------------------------------------------
def windowed_attention_forward(x, H, W, params, *, num_heads, window_size):
    B, N, C = x.shape
    assert N == H * W and C % num_heads == 0
    ws = window_size
    hd = C // num_heads
    scale = hd ** (-0.5)
    H_ = int(math.ceil(H / ws)) * ws
    W_ = int(math.ceil(W / ws)) * ws
    Lh, Lw = H_ // ws, W_ // ws
    L = Lh * Lw
    N_ = ws * ws

    # qkv projection (tiled Pallas matmul); qkv_bias=False -> zero bias
    qkv = pallas_linear(x.reshape(B * N, C), params["w_qkv"], params["b_qkv"])
    qkv = qkv.reshape(B, H, W, 3 * C)
    if H_ != H or W_ != W:           # pad_mode='constant' zero padding
        qkv = jnp.pad(qkv, ((0, 0), (0, H_ - H), (0, W_ - W), (0, 0)))

    kernel = partial(_window_attn_kernel,
                     num_heads=num_heads, head_dim=hd, scale=scale)

    # Fused path: window partition + fold expressed purely as BlockSpec index
    # maps over the padded channels-last layout (no 6-D transpose HBM round
    # trips).  Requires the (8, 128) block rule on the second-minor dim.
    fused = (ws % 8 == 0)
    if fused:
        out = pl.pallas_call(
            kernel,
            out_shape=jax.ShapeDtypeStruct((B, H_, W_, C), x.dtype),
            grid=(B, Lh, Lw),
            in_specs=[pl.BlockSpec((1, ws, ws, 3 * C),
                                   lambda b, i, j: (b, i, j, 0))],
            out_specs=pl.BlockSpec((1, ws, ws, C),
                                   lambda b, i, j: (b, i, j, 0)),
            compiler_params=pltpu.CompilerParams(
                dimension_semantics=("parallel", "parallel", "parallel")),
        )(qkv)
        out = out[:, :H, :W, :].reshape(B * N, C)
    else:
        # TODO(synk): fold this partition permute into the BlockSpec as well once
        # sub-8 sublane window tiles are worth special-casing; for ws % 8 != 0 we
        # materialize the windowed layout with one XLA copy each way.
        qkv_w = qkv.reshape(B, Lh, ws, Lw, ws, 3 * C).transpose(0, 1, 3, 2, 4, 5)
        qkv_w = qkv_w.reshape(B * L, N_, 3 * C)
        out = pl.pallas_call(
            kernel,
            out_shape=jax.ShapeDtypeStruct((B * L, N_, C), x.dtype),
            grid=(B * L,),
            in_specs=[pl.BlockSpec((1, N_, 3 * C), lambda g: (g, 0, 0))],
            out_specs=pl.BlockSpec((1, N_, C), lambda g: (g, 0, 0)),
            compiler_params=pltpu.CompilerParams(
                dimension_semantics=("parallel",)),
        )(qkv_w)
        out = out.reshape(B, Lh, Lw, ws, ws, C).transpose(0, 1, 3, 2, 4, 5)
        out = out.reshape(B, H_, W_, C)[:, :H, :W, :].reshape(B * N, C)

    # output projection (tiled Pallas matmul + bias); proj_drop p=0 -> identity
    out = pallas_linear(out, params["w_proj"], params["b_proj"])
    return out.reshape(B, N, C)


# ----------------------------------------------------------------------------
# Pure-JAX reference (sanity check of the Pallas path)
# ----------------------------------------------------------------------------
def reference_forward(x, H, W, params, *, num_heads, window_size):
    B, N, C = x.shape
    ws = window_size
    N_ = ws * ws
    H_ = int(math.ceil(H / ws)) * ws
    W_ = int(math.ceil(W / ws)) * ws
    hd = C // num_heads
    scale = hd ** (-0.5)

    qkv = x.reshape(B * N, C) @ params["w_qkv"] + params["b_qkv"]
    qkv = qkv.reshape(B, H, W, 3 * C)
    qkv = jnp.pad(qkv, ((0, 0), (0, H_ - H), (0, W_ - W), (0, 0)))
    Lh, Lw = H_ // ws, W_ // ws
    L = Lh * Lw
    qkv = qkv.reshape(B, Lh, ws, Lw, ws, 3 * C).transpose(0, 1, 3, 2, 4, 5)
    qkv = qkv.reshape(B, L, N_, 3, num_heads, hd).transpose(3, 0, 1, 4, 2, 5)
    q, k, v = qkv[0], qkv[1], qkv[2]
    attn = jnp.einsum("blhqd,blhkd->blhqk", q, k) * scale
    attn = jax.nn.softmax(attn, axis=-1)
    out = jnp.einsum("blhqk,blhkd->blhqd", attn, v)
    out = out.transpose(0, 1, 3, 2, 4).reshape(B, Lh, Lw, ws, ws, C)
    out = out.transpose(0, 1, 3, 2, 4, 5).reshape(B, H_, W_, C)[:, :H, :W, :]
    out = out.reshape(B * N, C) @ params["w_proj"] + params["b_proj"]
    return out.reshape(B, N, C)


# ----------------------------------------------------------------------------
if __name__ == "__main__":
    key = jax.random.PRNGKey(0)

    def make_params(k, C):
        k1, k2, k3 = jax.random.split(k, 3)
        return {
            # stored as (in_features, out_features) so kernels compute x @ w
            "w_qkv": 0.1 * jax.random.normal(k1, (C, 3 * C), dtype=jnp.float32),
            "b_qkv": jnp.zeros((3 * C,), dtype=jnp.float32),   # qkv_bias=False
            "w_proj": 0.1 * jax.random.normal(k2, (C, C), dtype=jnp.float32),
            "b_proj": 0.1 * jax.random.normal(k3, (C,), dtype=jnp.float32),
        }

    # (B, C, num_heads, window_size, H, W)
    configs = [
        (2, 32, 4, 8, 14, 14),    # fused partition path, exercises zero padding
        (2, 32, 4, 14, 14, 14),   # module-default window_size=14 (fallback path)
    ]

    for idx, (B, C, nh, ws, H, W) in enumerate(configs):
        kx, kp, key = jax.random.split(key, 3)
        x = jax.random.normal(kx, (B, H * W, C), dtype=jnp.float32)
        params = make_params(kp, C)

        out = windowed_attention_forward(
            x, H, W, params, num_heads=nh, window_size=ws)
        out = jax.block_until_ready(out)

        ref = reference_forward(x, H, W, params, num_heads=nh, window_size=ws)
        assert out.shape == (B, H * W, C)
        # approx reciprocal in the softmax denominator -> slightly looser tol
        assert jnp.allclose(out, ref, atol=2e-3, rtol=2e-3), \
            f"mismatch vs reference in config {idx}"

    print("KERNEL_OK")
</pallas_src>

<mosaic_0001>
module attributes {stable_mosaic.version = 11 : i64} {
  func.func @_linear_kernel(%arg0: i32, %arg1: memref<256x32xf32, #tpu.memory_space<vmem>>, %arg2: memref<32x96xf32, #tpu.memory_space<vmem>>, %arg3: memref<1x96xf32, #tpu.memory_space<vmem>>, %arg4: memref<256x96xf32, #tpu.memory_space<vmem>>) attributes {dimension_semantics = [#tpu.dimension_semantics<parallel>], iteration_bounds = array<i64: 2>, scalar_prefetch = 0 : i64, scratch_operands = 0 : i64, tpu.core_type = #tpu.core_type<tc>, window_params = [{transform_indices = @transform_0, window_bounds = array<i64: 256, 32>}, {pipeline_mode = #tpu.pipeline_mode<synchronous>, transform_indices = @transform_1, window_bounds = array<i64: 32, 96>}, {pipeline_mode = #tpu.pipeline_mode<synchronous>, transform_indices = @transform_2, window_bounds = array<i64: 1, 96>}, {transform_indices = @transform_3, window_bounds = array<i64: 256, 96>}]} {
    %c0 = arith.constant 0 : index
    %c0_0 = arith.constant 0 : index
    %0 = vector.load %arg1[%c0, %c0_0] : memref<256x32xf32, #tpu.memory_space<vmem>>, vector<256x32xf32>
    %c0_1 = arith.constant 0 : index
    %c0_2 = arith.constant 0 : index
    %1 = vector.load %arg2[%c0_1, %c0_2] : memref<32x96xf32, #tpu.memory_space<vmem>>, vector<32x96xf32>
    %cst = arith.constant dense<0.000000e+00> : vector<256x96xf32>
    %2 = tpu.matmul %0, %1, %cst {dimension_numbers = #tpu.dot_dimension_numbers<[1], [0], [0], [1], [0, 0, 1, 1], [], []>} : vector<256x32xf32>, vector<32x96xf32>, vector<256x96xf32> -> vector<256x96xf32>
    %c0_3 = arith.constant 0 : index
    %c0_4 = arith.constant 0 : index
    %3 = vector.load %arg3[%c0_3, %c0_4] : memref<1x96xf32, #tpu.memory_space<vmem>>, vector<1x96xf32>
    %4 = vector.broadcast %3 : vector<1x96xf32> to vector<256x96xf32>
    %5 = arith.addf %2, %4 : vector<256x96xf32>
    %c0_5 = arith.constant 0 : index
    %c0_6 = arith.constant 0 : index
    %6 = vector.load %arg4[%c0_5, %c0_6] : memref<256x96xf32, #tpu.memory_space<vmem>>, vector<256x96xf32>
    tpu.vector_store %arg4[%c0_5, %c0_6], %5 {strides = array<i32>} : memref<256x96xf32, #tpu.memory_space<vmem>>, vector<256x96xf32>,
    return
  }
  func.func @transform_0(%arg0: i32) -> (i32, i32) {
    %c0_i32 = arith.constant 0 : i32
    %c0_i32_0 = arith.constant 0 : i32
    return %arg0, %c0_i32 : i32, i32
  }
  func.func @transform_1(%arg0: i32) -> (i32, i32) {
    %c0_i32 = arith.constant 0 : i32
    %c0_i32_0 = arith.constant 0 : i32
    %c0_i32_1 = arith.constant 0 : i32
    return %c0_i32, %c0_i32_0 : i32, i32
  }
  func.func @transform_2(%arg0: i32) -> (i32, i32) {
    %c0_i32 = arith.constant 0 : i32
    %c0_i32_0 = arith.constant 0 : i32
    %c0_i32_1 = arith.constant 0 : i32
    return %c0_i32, %c0_i32_0 : i32, i32
  }
  func.func @transform_3(%arg0: i32) -> (i32, i32) {
    %c0_i32 = arith.constant 0 : i32
    %c0_i32_0 = arith.constant 0 : i32
    return %arg0, %c0_i32 : i32, i32
  }
}

</mosaic_0001>

<bundles_post_ra>
// kernel: tpu_custom_call.1
= control target key start
LH: loop header
LB: loop body
LE: loop exit
PB: predicated region body
PF: predicated region fallthrough
CT: control target
= control target key end

     0   :  { %s1289_s12 = smov 0   ;;  %s1291_s13 = smov 0   ;;  %s1647_s0 = inlined_call_operand.vmem [shape: f32[392,32], index: 0, kind: input, shape index: {}]   ;;  %s1648_s1 = inlined_call_operand.vmem [shape: f32[32,96], index: 1, kind: input, shape index: {}]   ;;  %s1649_s2 = inlined_call_operand.vmem [shape: f32[1,96], index: 2, kind: input, shape index: {}]   ;;  %s1650_s3 = inlined_call_operand.vmem [shape: f32[392,96], index: 3, kind: output, shape index: {}]  }
   0x1   :  { %s1293_s14 = smov 0  }
   0x2 LB: > { %s1302_s15 = sadd.s32 4294967295, %s1235_s14   ;;  %s1304_s16 = sadd.s32 1, %s1235_s14   ;;  %s1235_s14 = sphi %s1293_s14, %s1659_s14   ;;  %s1231_s13 = sphi %s1291_s13, %s1658_s13   ;;  %s1227_s12 = sphi %s1289_s12, %s1657_s12  }
   0x3   : > { %s85_s17 = ssub.s32 %s1235_s14, %s1304_s16  ;;  %s88_s18 = sadd.s32 1, %s1231_s13 }
   0x4   : > { %p86_p0 = scmp.eq.s32.totalorder %s85_s17, 0  ;;  %p98_p1 = scmp.ne.s32.totalorder %s1231_s13, %s1227_s12 }
   0x5   : > { %p99_p2 = scmp.eq.s32.totalorder %s1302_s15, 1  ;;  %p932_p3 = scmp.ge.s32.totalorder %s1235_s14, 1 }
   0x6   : > { %s1312_s19 = scalar_select %p86_p0, %s1231_s13, %s88_s18  }
   0x7   : > { %p1314_p4 = por %p99_p2, %p98_p1  ;;  %p146_p5 = scmp.lt.s32.totalorder %s1235_s14, 3 }
   0x9   : > { %p147_p6 = pnand %p932_p3, %p146_p5 }
   0xa   : > { %v224_v0 = vld [vmem:[%s1648_s1] sm:$0xff] (!%p147_p6)  ;;  %v225_v1 = vld [vmem:[%s1648_s1 + $0x8] sm:$0xff] (!%p147_p6)  ;;  %v226_v2 = vld [vmem:[%s1648_s1 + $0x10] sm:$0xff] (!%p147_p6)  ;;  %s1328_s27 = sshll.u32 (!%p147_p6), %s1302_s15, 5  ;;  %vm235_vm0 = vcmask (!%p147_p6), 261120   ;;  %s170_s8 = sand.u32 (!%p147_p6), 1, %s1227_s12  }
   0xb   : > { %150 = sbr.rel (%p147_p6) target bundleno = 325 (0x145), region = 32  ;;  %v1081_v3 = vpack.c.bf16 (!%p147_p6), %v225_v1, %v224_v0  ;;  %v227_v4 = vld [vmem:[%s1648_s1 + $0x18] sm:$0xff] (!%p147_p6)  ;;  %p178_p7 = scmp.lt.s32.totalorder (!%p147_p6), %s1328_s27, 48  ;;  %v1408_v38 = vld [vmem:[%s1649_s2] ss:$0 sm:$0xff] (!%p147_p6)  ;;  %vm557_vm1 = vcmask (!%p147_p6), 785408  }
   0xc   : > { %v1085_v5 = vpack.c.bf16 (!%p147_p6), %v227_v4, %v226_v2  ;;  %s933_s9 = sshll.u32 (!%p147_p6), %s170_s8, 8 }
   0xd   : > { %1082 = vmatprep.subr.bf16.mxu0 (!%p147_p6), %v1081_v3  ;;  %1089 = vmatprep.subr.bf16.mxu1 (!%p147_p6), %v1081_v3  ;;  %s1414_s12 = scalar_lea.vmem (!%p147_p6), [#allocation2], %s933_s9  }
   0xe   : > { %1084 = vmatpush3.bf16.msra.mxu0 (!%p147_p6), %v1081_v3  ;;  %1091 = vmatpush3.bf16.msra.mxu1 (!%p147_p6), %v1081_v3 }
   0xf   : > { %1086 = vmatprep.subr.bf16.mxu0 (!%p147_p6), %v1085_v5  ;;  %1090 = vmatprep.subr.bf16.mxu1 (!%p147_p6), %v1085_v5 }
  0x12   : > { %s179_s30 = scalar_select %p178_p7, %s1328_s27, 48  ;;  %1088 = vmatpush3.bf16.msra.mxu0 %v1085_v5  ;;  %1092 = vmatpush3.bf16.msra.mxu1 %v1085_v5 }
  0x13   : > { %s598_s14 = ssub.s32 (%p1314_p4), 49, %s1328_s27  ;;  %s986_s17 = sshll.u32 (%p1314_p4), %s1302_s15, 8 }
  0x14   : > { %s935_s4 = sshll.u32 %s179_s30, 3  ;;  %p599_p8 = scmp.lt.s32.totalorder (%p1314_p4), %s598_s14, 32 }
  0x15   : > { %s1338_s7 = scalar_lea.vmem %s1647_s0, %s935_s4  ;;  %s1515_s22 = scalar_lea.vmem (%p1314_p4), %s1650_s3, %s986_s17  }
  0x16   : > { %v192_v6 = vld [vmem:[%s1338_s7] sm:$0xff]  ;;  %v193_v8 = vld [vmem:[%s1338_s7 + $0x8] sm:$0xff]  ;;  %v194_v10 = vld [vmem:[%s1338_s7 + $0x10] sm:$0xff] }
  0x17   : > { %v208_v7 = vld [vmem:[%s1338_s7 + $0x80] sm:$0xff]  ;;  %v209_v9 = vld [vmem:[%s1338_s7 + $0x88] sm:$0xff]  ;;  %1033 = vmatprep.mubr.msk.f32.mxu0 %vm235_vm0, %v192_v6  ;;  %v210_v11 = vld [vmem:[%s1338_s7 + $0x90] sm:$0xff] }
  0x18   : > { %1057 = vmatprep.mubr.msk.f32.mxu1 %vm235_vm0, %v208_v7  ;;  %1034 = vmatmul.mubr.msk.f32.vlgmr.msra.gmra.mrb[0].mxu0 %vm235_vm0, %v193_v8  ;;  %v195_v12 = vld [vmem:[%s1338_s7 + $0x18] sm:$0xff]  ;;  %v196_v14 = vld [vmem:[%s1338_s7 + $0x20] sm:$0xff]  ;;  %v197_v16 = vld [vmem:[%s1338_s7 + $0x28] sm:$0xff] }
  0x19   : > { %1058 = vmatmul.mubr.msk.f32.vlgmr.msra.gmra.mrb[0].mxu1 %vm235_vm0, %v209_v9  ;;  %1036 = vmatprep.mubr.msk.f32.mxu0 %vm235_vm0, %v194_v10  ;;  %v211_v13 = vld [vmem:[%s1338_s7 + $0x98] sm:$0xff]  ;;  %v212_v15 = vld [vmem:[%s1338_s7 + $0xa0] sm:$0xff]  ;;  %v213_v17 = vld [vmem:[%s1338_s7 + $0xa8] sm:$0xff] }
  0x1a   : > { %1060 = vmatprep.mubr.msk.f32.mxu1 %vm235_vm0, %v210_v11  ;;  %v198_v18 = vld [vmem:[%s1338_s7 + $0x30] sm:$0xff]  ;;  %v199_v20 = vld [vmem:[%s1338_s7 + $0x38] sm:$0xff]  ;;  %v200_v22 = vld [vmem:[%s1338_s7 + $0x40] sm:$0xff] }
  0x1b   : > { %v214_v19 = vld [vmem:[%s1338_s7 + $0xb0] sm:$0xff]  ;;  %v215_v21 = vld [vmem:[%s1338_s7 + $0xb8] sm:$0xff]  ;;  %v216_v23 = vld [vmem:[%s1338_s7 + $0xc0] sm:$0xff] }
  0x1c   : > { %1037 = vmatmul.mubr.msk.f32.gmra.mrb[2].mxu0 %vm235_vm0, %v195_v12  ;;  %v201_v24 = vld [vmem:[%s1338_s7 + $0x48] sm:$0xff]  ;;  %v202_v26 = vld [vmem:[%s1338_s7 + $0x50] sm:$0xff]  ;;  %v203_v28 = vld [vmem:[%s1338_s7 + $0x58] sm:$0xff] }
  0x1d   : > { %1061 = vmatmul.mubr.msk.f32.gmra.mrb[2].mxu1 %vm235_vm0, %v211_v13  ;;  %1039 = vmatprep.mubr.msk.f32.mxu0 %vm235_vm0, %v196_v14  ;;  %v217_v25 = vld [vmem:[%s1338_s7 + $0xc8] sm:$0xff]  ;;  %v218_v27 = vld [vmem:[%s1338_s7 + $0xd0] sm:$0xff]  ;;  %v219_v29 = vld [vmem:[%s1338_s7 + $0xd8] sm:$0xff] }
  0x1e   : > { %1063 = vmatprep.mubr.msk.f32.mxu1 %vm235_vm0, %v212_v15  ;;  %v204_v30 = vld [vmem:[%s1338_s7 + $0x60] sm:$0xff]  ;;  %v205_v32 = vld [vmem:[%s1338_s7 + $0x68] sm:$0xff]  ;;  %v206_v34 = vld [vmem:[%s1338_s7 + $0x70] sm:$0xff] }
  0x1f   : > { %v220_v31 = vld [vmem:[%s1338_s7 + $0xe0] sm:$0xff]  ;;  %v221_v33 = vld [vmem:[%s1338_s7 + $0xe8] sm:$0xff]  ;;  %v222_v35 = vld [vmem:[%s1338_s7 + $0xf0] sm:$0xff] }
  0x20   : > { %1040 = vmatmul.mubr.msk.f32.gmra.mrb[4].mxu0 %vm235_vm0, %v197_v16  ;;  %v207_v36 = vld [vmem:[%s1338_s7 + $0x78] sm:$0xff] }
  0x21   : > { %1064 = vmatmul.mubr.msk.f32.gmra.mrb[4].mxu1 %vm235_vm0, %v213_v17  ;;  %1042 = vmatprep.mubr.msk.f32.mxu0 %vm235_vm0, %v198_v18  ;;  %v223_v37 = vld [vmem:[%s1338_s7 + $0xf8] sm:$0xff] }
  0x22   : > { %1066 = vmatprep.mubr.msk.f32.mxu1 %vm235_vm0, %v214_v19 }
  0x24   : > { %1043 = vmatmul.mubr.msk.f32.gmra.mrb[6].mxu0 %vm235_vm0, %v199_v20 }
  0x25   : > { %1067 = vmatmul.mubr.msk.f32.gmra.mrb[6].mxu1 %vm235_vm0, %v215_v21  ;;  %1045 = vmatprep.mubr.msk.f32.mxu0 %vm235_vm0, %v200_v22 }
  0x26   : > { %1069 = vmatprep.mubr.msk.f32.mxu1 %vm235_vm0, %v216_v23 }
  0x28   : > { %1046 = vmatmul.mubr.msk.f32.gmra.mrb[8].mxu0 %vm235_vm0, %v201_v24 }
  0x29   : > { %1070 = vmatmul.mubr.msk.f32.gmra.mrb[8].mxu1 %vm235_vm0, %v217_v25  ;;  %1048 = vmatprep.mubr.msk.f32.mxu0 %vm235_vm0, %v202_v26 }
  0x2a   : > { %1072 = vmatprep.mubr.msk.f32.mxu1 %vm235_vm0, %v218_v27 }
  0x2c   : > { %1049 = vmatmul.mubr.msk.f32.gmra.mrb[10].mxu0 %vm235_vm0, %v203_v28 }
  0x2d   : > { %1073 = vmatmul.mubr.msk.f32.gmra.mrb[10].mxu1 %vm235_vm0, %v219_v29  ;;  %1051 = vmatprep.mubr.msk.f32.mxu0 %vm235_vm0, %v204_v30 }
  0x2e   : > { %1075 = vmatprep.mubr.msk.f32.mxu1 %vm235_vm0, %v220_v31 }
  0x30   : > { %1052 = vmatmul.mubr.msk.f32.gmra.mrb[12].mxu0 %vm235_vm0, %v205_v32 }
  0x31   : > { %1076 = vmatmul.mubr.msk.f32.gmra.mrb[12].mxu1 %vm235_vm0, %v221_v33  ;;  %1054 = vmatprep.mubr.msk.f32.mxu0 %vm235_vm0, %v206_v34 }
  0x32   : > { %1078 = vmatprep.mubr.msk.f32.mxu1 %vm235_vm0, %v222_v35 }
  0x34   : > { %1055 = vmatmul.mubr.msk.f32.gmra.mrb[14].mxu0 %vm235_vm0, %v207_v36 }
  0x35   : > { %1079 = vmatmul.mubr.msk.f32.gmra.mrb[14].mxu1 %vm235_vm0, %v223_v37 }
  0xeb   : > { %v1035_v39 = vpop.f32.mrb[0].mxu0 }
  0xec   : > { %v1059_v40 = vpop.f32.mrb[0].mxu1  ;;  %v404_v41 = vadd.f32 %v1035_v39, %v1408_v38  ;;  %v398_v43 = vpop.f32.mrb[1].mxu0 }
  0xed   : > { %v484_v42 = vadd.f32 %v1059_v40, %v1408_v38  ;;  %v478_v44 = vpop.f32.mrb[1].mxu1  ;;  %v399_v45 = vadd.f32 %v1408_v38, %v398_v43 }
  0xee   : > { %v479_v46 = vadd.f32 %v1408_v38, %v478_v44  ;;  %559 = vst.msk [vmem:[%s1414_s12 + $0x8] sm:$0xff] %vm557_vm1, %v404_v41 }
  0xef   : > { %575 = vst.msk [vmem:[%s1414_s12 + $0x88] sm:$0xff] %vm557_vm1, %v484_v42  ;;  %558 = vst.msk [vmem:[%s1414_s12] sm:$0xff] %vm557_vm1, %v399_v45  ;;  %v1038_v47 = vpop.f32.mrb[2].mxu0 }
  0xf0   : > { %574 = vst.msk [vmem:[%s1414_s12 + $0x80] sm:$0xff] %vm557_vm1, %v479_v46  ;;  %v1062_v48 = vpop.f32.mrb[2].mxu1  ;;  %v414_v49 = vadd.f32 %v1038_v47, %v1408_v38  ;;  %v408_v51 = vpop.f32.mrb[3].mxu0 }
  0xf1   : > { %v494_v50 = vadd.f32 %v1062_v48, %v1408_v38  ;;  %v488_v52 = vpop.f32.mrb[3].mxu1  ;;  %v409_v53 = vadd.f32 %v1408_v38, %v408_v51 }
  0xf2   : > { %v489_v54 = vadd.f32 %v1408_v38, %v488_v52  ;;  %561 = vst.msk [vmem:[%s1414_s12 + $0x18] sm:$0xff] %vm557_vm1, %v414_v49 }
  0xf3   : > { %577 = vst.msk [vmem:[%s1414_s12 + $0x98] sm:$0xff] %vm557_vm1, %v494_v50  ;;  %560 = vst.msk [vmem:[%s1414_s12 + $0x10] sm:$0xff] %vm557_vm1, %v409_v53  ;;  %v1041_v55 = vpop.f32.mrb[4].mxu0 }
  0xf4   : > { %576 = vst.msk [vmem:[%s1414_s12 + $0x90] sm:$0xff] %vm557_vm1, %v489_v54  ;;  %v1065_v56 = vpop.f32.mrb[4].mxu1  ;;  %v424_v57 = vadd.f32 %v1041_v55, %v1408_v38  ;;  %v418_v59 = vpop.f32.mrb[5].mxu0 }
  0xf5   : > { %v504_v58 = vadd.f32 %v1065_v56, %v1408_v38  ;;  %v498_v60 = vpop.f32.mrb[5].mxu1  ;;  %v419_v61 = vadd.f32 %v1408_v38, %v418_v59 }
  0xf6   : > { %v499_v62 = vadd.f32 %v1408_v38, %v498_v60  ;;  %563 = vst.msk [vmem:[%s1414_s12 + $0x28] sm:$0xff] %vm557_vm1, %v424_v57 }
  0xf7   : > { %579 = vst.msk [vmem:[%s1414_s12 + $0xa8] sm:$0xff] %vm557_vm1, %v504_v58  ;;  %562 = vst.msk [vmem:[%s1414_s12 + $0x20] sm:$0xff] %vm557_vm1, %v419_v61  ;;  %v1044_v63 = vpop.f32.mrb[6].mxu0 }
  0xf8   : > { %578 = vst.msk [vmem:[%s1414_s12 + $0xa0] sm:$0xff] %vm557_vm1, %v499_v62  ;;  %v1068_v0 = vpop.f32.mrb[6].mxu1  ;;  %v434_v1 = vadd.f32 %v1044_v63, %v1408_v38  ;;  %v428_v3 = vpop.f32.mrb[7].mxu0 }
  0xf9   : > { %v514_v2 = vadd.f32 %v1068_v0, %v1408_v38  ;;  %v508_v4 = vpop.f32.mrb[7].mxu1  ;;  %v429_v5 = vadd.f32 %v1408_v38, %v428_v3 }
  0xfa   : > { %v509_v6 = vadd.f32 %v1408_v38, %v508_v4  ;;  %565 = vst.msk [vmem:[%s1414_s12 + $0x38] sm:$0xff] %vm557_vm1, %v434_v1 }
  0xfb   : > { %581 = vst.msk [vmem:[%s1414_s12 + $0xb8] sm:$0xff] %vm557_vm1, %v514_v2  ;;  %564 = vst.msk [vmem:[%s1414_s12 + $0x30] sm:$0xff] %vm557_vm1, %v429_v5  ;;  %v1047_v7 = vpop.f32.mrb[8].mxu0 }
  0xfc   : > { %580 = vst.msk [vmem:[%s1414_s12 + $0xb0] sm:$0xff] %vm557_vm1, %v509_v6  ;;  %v1071_v8 = vpop.f32.mrb[8].mxu1  ;;  %v444_v9 = vadd.f32 %v1047_v7, %v1408_v38  ;;  %v438_v11 = vpop.f32.mrb[9].mxu0 }
  0xfd   : > { %v524_v10 = vadd.f32 %v1071_v8, %v1408_v38  ;;  %v518_v12 = vpop.f32.mrb[9].mxu1  ;;  %v439_v13 = vadd.f32 %v1408_v38, %v438_v11 }
  0xfe   : > { %v519_v14 = vadd.f32 %v1408_v38, %v518_v12  ;;  %567 = vst.msk [vmem:[%s1414_s12 + $0x48] sm:$0xff] %vm557_vm1, %v444_v9 }
  0xff   : > { %583 = vst.msk [vmem:[%s1414_s12 + $0xc8] sm:$0xff] %vm557_vm1, %v524_v10  ;;  %566 = vst.msk [vmem:[%s1414_s12 + $0x40] sm:$0xff] %vm557_vm1, %v439_v13  ;;  %v1050_v15 = vpop.f32.mrb[10].mxu0 }
 0x100   : > { %582 = vst.msk [vmem:[%s1414_s12 + $0xc0] sm:$0xff] %vm557_vm1, %v519_v14  ;;  %v1074_v16 = vpop.f32.mrb[10].mxu1  ;;  %v454_v17 = vadd.f32 %v1050_v15, %v1408_v38  ;;  %v448_v19 = vpop.f32.mrb[11].mxu0 }
 0x101   : > { %v534_v18 = vadd.f32 %v1074_v16, %v1408_v38  ;;  %v528_v20 = vpop.f32.mrb[11].mxu1  ;;  %v449_v21 = vadd.f32 %v1408_v38, %v448_v19 }
 0x102   : > { %v529_v22 = vadd.f32 %v1408_v38, %v528_v20  ;;  %569 = vst.msk [vmem:[%s1414_s12 + $0x58] sm:$0xff] %vm557_vm1, %v454_v17 }
 0x103   : > { %585 = vst.msk [vmem:[%s1414_s12 + $0xd8] sm:$0xff] %vm557_vm1, %v534_v18  ;;  %568 = vst.msk [vmem:[%s1414_s12 + $0x50] sm:$0xff] %vm557_vm1, %v449_v21  ;;  %v1053_v23 = vpop.f32.mrb[12].mxu0 }
 0x104   : > { %584 = vst.msk [vmem:[%s1414_s12 + $0xd0] sm:$0xff] %vm557_vm1, %v529_v22  ;;  %v1077_v24 = vpop.f32.mrb[12].mxu1  ;;  %v464_v25 = vadd.f32 %v1053_v23, %v1408_v38  ;;  %v458_v27 = vpop.f32.mrb[13].mxu0 }
 0x105   : > { %v544_v26 = vadd.f32 %v1077_v24, %v1408_v38  ;;  %v538_v28 = vpop.f32.mrb[13].mxu1  ;;  %v459_v29 = vadd.f32 %v1408_v38, %v458_v27 }
 0x106   : > { %v539_v30 = vadd.f32 %v1408_v38, %v538_v28  ;;  %571 = vst.msk [vmem:[%s1414_s12 + $0x68] sm:$0xff] %vm557_vm1, %v464_v25  ;;  %596 = sbr.rel (!%p1314_p4) target bundleno = 325 (0x145), region = 36 }
 0x107   : > { %587 = vst.msk [vmem:[%s1414_s12 + $0xe8] sm:$0xff] %vm557_vm1, %v544_v26  ;;  %570 = vst.msk [vmem:[%s1414_s12 + $0x60] sm:$0xff] %vm557_vm1, %v459_v29  ;;  %v1056_v31 = vpop.f32.mrb[14].mxu0 }
 0x108   : > { %586 = vst.msk [vmem:[%s1414_s12 + $0xe0] sm:$0xff] %vm557_vm1, %v539_v30  ;;  %v1080_v32 = vpop.f32.mrb[14].mxu1  ;;  %v474_v33 = vadd.f32 %v1056_v31, %v1408_v38  ;;  %v468_v35 = vpop.f32.mrb[15].mxu0 }
 0x109   : > { %v554_v34 = vadd.f32 %v1080_v32, %v1408_v38  ;;  %v548_v36 = vpop.f32.mrb[15].mxu1  ;;  %v469_v37 = vadd.f32 %v1408_v38, %v468_v35 }
 0x10a   : > { %v549_v39 = vadd.f32 %v1408_v38, %v548_v36  ;;  %573 = vst.msk [vmem:[%s1414_s12 + $0x78] sm:$0xff] %vm557_vm1, %v474_v33 }
 0x10b   : > { %589 = vst.msk [vmem:[%s1414_s12 + $0xf8] sm:$0xff] %vm557_vm1, %v554_v34  ;;  %572 = vst.msk [vmem:[%s1414_s12 + $0x70] sm:$0xff] %vm557_vm1, %v469_v37 }
 0x10c   : > { %588 = vst.msk [vmem:[%s1414_s12 + $0xf0] sm:$0xff] %vm557_vm1, %v549_v39 }
 0x10d   : > { %s1661_s14 = smov (!%p599_p8, %s598_s14), 32 }
 0x10e   : > { %s971_s23 = sshll.u32 %s1661_s14, 7 }
 0x10f   : > { %p974_p9 = scmp.eq.s32.totalorder %s971_s23, 0 }
 0x110   : > { %s1521_s24 = sshrl.u32 (!%p974_p9), %s1661_s14, 5 }
 0x111   : > { %607 = sbr.rel (%p974_p9) target bundleno = 325 (0x145), region = 40  ;;  %p975_p10 = scmp.le.s32.totalorder (!%p974_p9), %s1521_s24, 0 }
 0x118   : > { %885 = sbr.rel (%p975_p10) target bundleno = 304 (0x130), region = 116  ;;  %s1652_s15 = smov (!%p975_p10), %s1515_s22 }
 0x119   : > { %s1653_s20 = smov (!%p975_p10), %s1414_s12  ;;  %s1530_s25 = smov (!%p975_p10), 0  }
 0x11a   : > { %s1532_s26 = smov (!%p975_p10), 0  }
 0x11f LB: >> { %v731_v38 = vld [vmem:[%s1243_s20] sm:$0xff]  ;;  %v733_v40 = vld [vmem:[%s1243_s20 + $0x8] sm:$0xff]  ;;  %v735_v41 = vld [vmem:[%s1243_s20 + $0x10] sm:$0xff]  ;;  %s795_s27 = sadd.s32 1, %s1247_s25  ;;  %s725_s26 = sadd.s32 1, %s1251_s26   ;;  %s1251_s26 = sphi %s1532_s26, %s725_s26   ;;  %s1247_s25 = sphi %s1530_s25, %s1656_s25   ;;  %s1243_s20 = sphi %s1653_s20, %s1655_s20   ;;  %s1239_s15 = sphi %s1652_s15, %s1654_s15  }
 0x120   : >> { %732 = vst [vmem:[%s1239_s15] sm:$0xff] %v731_v38  ;;  %734 = vst [vmem:[%s1239_s15 + $0x8] sm:$0xff] %v733_v40  ;;  %v737_v42 = vld [vmem:[%s1243_s20 + $0x18] sm:$0xff]  ;;  %v739_v43 = vld [vmem:[%s1243_s20 + $0x20] sm:$0xff]  ;;  %p796_p11 = scmp.ge.s32.totalorder %s795_s27, %s1521_s24  ;;  %p724_p12 = scmp.ge.s32.totalorder %s725_s26, %s1521_s24 }
 0x121   : >> { %736 = vst [vmem:[%s1239_s15 + $0x10] sm:$0xff] %v735_v41  ;;  %v741_v44 = vld [vmem:[%s1243_s20 + $0x28] sm:$0xff]  ;;  %738 = vst [vmem:[%s1239_s15 + $0x18] sm:$0xff] %v737_v42  ;;  %v743_v45 = vld [vmem:[%s1243_s20 + $0x30] sm:$0xff] }
 0x122   : >> { %740 = vst [vmem:[%s1239_s15 + $0x20] sm:$0xff] %v739_v43  ;;  %742 = vst [vmem:[%s1239_s15 + $0x28] sm:$0xff] %v741_v44  ;;  %v745_v46 = vld [vmem:[%s1243_s20 + $0x38] sm:$0xff]  ;;  %v747_v47 = vld [vmem:[%s1243_s20 + $0x40] sm:$0xff]  ;;  %s1663_s27 = smov (%p796_p11, %s795_s27), 0 }
 0x123   : >> { %744 = vst [vmem:[%s1239_s15 + $0x30] sm:$0xff] %v743_v45  ;;  %746 = vst [vmem:[%s1239_s15 + $0x38] sm:$0xff] %v745_v46  ;;  %v749_v48 = vld [vmem:[%s1243_s20 + $0x48] sm:$0xff]  ;;  %v751_v49 = vld [vmem:[%s1243_s20 + $0x50] sm:$0xff]  ;;  %s976_s28 = sshll.u32 %s1663_s27, 8  ;;  %s1656_s25 = smov %s1663_s27 }
 0x124   : >> { %748 = vst [vmem:[%s1239_s15 + $0x40] sm:$0xff] %v747_v47  ;;  %v753_v50 = vld [vmem:[%s1243_s20 + $0x58] sm:$0xff]  ;;  %750 = vst [vmem:[%s1239_s15 + $0x48] sm:$0xff] %v749_v48  ;;  %v755_v51 = vld [vmem:[%s1243_s20 + $0x60] sm:$0xff]  ;;  %s1588_s29 = scalar_lea.vmem %s1414_s12, %s976_s28 [#allocation2]   ;;  %s801_s30 = scalar_lea.vmem %s1515_s22, %s976_s28  }
 0x125   : >> { %752 = vst [vmem:[%s1239_s15 + $0x50] sm:$0xff] %v751_v49  ;;  %754 = vst [vmem:[%s1239_s15 + $0x58] sm:$0xff] %v753_v50  ;;  %v757_v52 = vld [vmem:[%s1243_s20 + $0x68] sm:$0xff]  ;;  %v759_v53 = vld [vmem:[%s1243_s20 + $0x70] sm:$0xff] }
 0x126   : >> { %756 = vst [vmem:[%s1239_s15 + $0x60] sm:$0xff] %v755_v51  ;;  %758 = vst [vmem:[%s1239_s15 + $0x68] sm:$0xff] %v757_v52  ;;  %v761_v54 = vld [vmem:[%s1243_s20 + $0x78] sm:$0xff]  ;;  %v763_v55 = vld [vmem:[%s1243_s20 + $0x80] sm:$0xff] }
 0x127   : >> { %760 = vst [vmem:[%s1239_s15 + $0x70] sm:$0xff] %v759_v53  ;;  %v765_v56 = vld [vmem:[%s1243_s20 + $0x88] sm:$0xff]  ;;  %762 = vst [vmem:[%s1239_s15 + $0x78] sm:$0xff] %v761_v54  ;;  %v767_v57 = vld [vmem:[%s1243_s20 + $0x90] sm:$0xff] }
 0x128   : >> { %764 = vst [vmem:[%s1239_s15 + $0x80] sm:$0xff] %v763_v55  ;;  %766 = vst [vmem:[%s1239_s15 + $0x88] sm:$0xff] %v765_v56  ;;  %v769_v58 = vld [vmem:[%s1243_s20 + $0x98] sm:$0xff]  ;;  %v771_v59 = vld [vmem:[%s1243_s20 + $0xa0] sm:$0xff] }
 0x129   : >> { %768 = vst [vmem:[%s1239_s15 + $0x90] sm:$0xff] %v767_v57  ;;  %770 = vst [vmem:[%s1239_s15 + $0x98] sm:$0xff] %v769_v58  ;;  %v773_v60 = vld [vmem:[%s1243_s20 + $0xa8] sm:$0xff]  ;;  %v775_v61 = vld [vmem:[%s1243_s20 + $0xb0] sm:$0xff]  ;;  %727 = sbr.rel (!%p724_p12) target bundleno = 287 (0x11f), region = 122 }
 0x12a   : >> { %772 = vst [vmem:[%s1239_s15 + $0xa0] sm:$0xff] %v771_v59  ;;  %v777_v62 = vld [vmem:[%s1243_s20 + $0xb8] sm:$0xff]  ;;  %774 = vst [vmem:[%s1239_s15 + $0xa8] sm:$0xff] %v773_v60  ;;  %v779_v63 = vld [vmem:[%s1243_s20 + $0xc0] sm:$0xff] }
 0x12b   : >> { %776 = vst [vmem:[%s1239_s15 + $0xb0] sm:$0xff] %v775_v61  ;;  %778 = vst [vmem:[%s1239_s15 + $0xb8] sm:$0xff] %v777_v62  ;;  %v781_v0 = vld [vmem:[%s1243_s20 + $0xc8] sm:$0xff]  ;;  %v783_v1 = vld [vmem:[%s1243_s20 + $0xd0] sm:$0xff] }
 0x12c   : >> { %780 = vst [vmem:[%s1239_s15 + $0xc0] sm:$0xff] %v779_v63  ;;  %782 = vst [vmem:[%s1239_s15 + $0xc8] sm:$0xff] %v781_v0  ;;  %v785_v2 = vld [vmem:[%s1243_s20 + $0xd8] sm:$0xff]  ;;  %v787_v3 = vld [vmem:[%s1243_s20 + $0xe0] sm:$0xff] }
 0x12d   : >> { %784 = vst [vmem:[%s1239_s15 + $0xd0] sm:$0xff] %v783_v1  ;;  %v789_v4 = vld [vmem:[%s1243_s20 + $0xe8] sm:$0xff]  ;;  %786 = vst [vmem:[%s1239_s15 + $0xd8] sm:$0xff] %v785_v2  ;;  %v791_v5 = vld [vmem:[%s1243_s20 + $0xf0] sm:$0xff] }
 0x12e   : >> { %788 = vst [vmem:[%s1239_s15 + $0xe0] sm:$0xff] %v787_v3  ;;  %790 = vst [vmem:[%s1239_s15 + $0xe8] sm:$0xff] %v789_v4  ;;  %v793_v6 = vld [vmem:[%s1243_s20 + $0xf8] sm:$0xff]  ;;  %s1655_s20 = smov %s1588_s29 }
 0x12f   : >> { %792 = vst [vmem:[%s1239_s15 + $0xf0] sm:$0xff] %v791_v5  ;;  %794 = vst [vmem:[%s1239_s15 + $0xf8] sm:$0xff] %v793_v6  ;;  %s1654_s15 = smov %s801_s30 }
 0x130 PF: > { %s1629_s4 = sand.u32 31, %s1661_s14   ;;  %s987_s5 = sshll.u32 %s1521_s24, 8 }
 0x131   : > { %s806_s6 = scalar_lea.vmem %s1414_s12, %s987_s5 [#allocation2]   ;;  %s808_s7 = scalar_lea.vmem %s1515_s22, %s987_s5  }
 0x132   : > { %p981_p13 = scmp.le.s32.totalorder %s1629_s4, 0 }
 0x133   : > { %s1253_s8 = smov (!%p981_p13), %s808_s7   ;;  %s1257_s9 = smov (!%p981_p13), %s806_s6  }
 0x134   : > { %899 = sbr.rel (%p981_p13) target bundleno = 325 (0x145), region = 127  ;;  %s1261_s10 = smov (!%p981_p13), 0  }
 0x135   : > { %s1265_s11 = smov (!%p981_p13), 0  }
 0x13b LB: >> { %v818_v7 = vld [vmem:[%s1259_s9] sm:$0xff]  ;;  %s820_s14 = sadd.s32 1, %s1263_s10  ;;  %s812_s11 = sadd.s32 1, %s1267_s11   ;;  %s1267_s11 = sphi %s1265_s11, %s812_s11   ;;  %s1263_s10 = sphi %s1261_s10, %s1262_s10   ;;  %s1259_s9 = sphi %s1257_s9, %s825_s9   ;;  %s1255_s8 = sphi %s1253_s8, %s826_s8  }
 0x13c   : >> { %819 = vst [vmem:[%s1255_s8] sm:$0xff] %v818_v7  ;;  %p821_p0 = scmp.ge.s32.totalorder %s820_s14, %s1629_s4  ;;  %p811_p1 = scmp.ge.s32.totalorder %s812_s11, %s1629_s4 }
 0x13e   : >> { %s1665_s14 = smov (%p821_p0, %s820_s14), 0  ;;  %814 = sbr.rel (!%p811_p1) target bundleno = 315 (0x13b), region = 133 }
 0x13f   : >> { %s982_s12 = sshll.u32 %s1665_s14, 3  ;;  %s1262_s10 = smov %s1665_s14  }
 0x140   : >> { %s825_s9 = scalar_lea.vmem %s806_s6, %s982_s12 [#allocation2]   ;;  %s826_s8 = scalar_lea.vmem %s808_s7, %s982_s12  }
 0x145 PF: > { %p10_p2 = scmp.ge.s32.totalorder %s1304_s16, 4   ;;  %s1657_s12 = smov %s1231_s13 }
 0x146   : > { %s1658_s13 = smov %s1312_s19  ;;  %s1659_s14 = smov %s1304_s16 }
 0x147   :  { %12 = sbr.rel (!%p10_p2) target bundleno = 2 (0x2), region = 144 }

</bundles_post_ra>
